<compile_context>
chip_gen: v5e
topology: v5e:2x2
jax: 0.10.0
libtpu: 0.0.40
codegen_flags: <defaults>
</compile_context>

<pallas_src>
import functools
import math

import jax
import jax.numpy as jnp
from jax.experimental import pallas as pl
from jax.experimental.pallas import tpu as pltpu


# ---------------------------------------------------------------------------
# Wavelets.  Each entry is (base_fn, constant) -- the constant is folded into
# the fused conv weight instead of being multiplied per element in the kernel.
# ---------------------------------------------------------------------------
_MH_CONST = 2.0 / (math.sqrt(3.0) * math.pi ** 0.25)


def _mexican_hat_base(x):
    x2 = x * x
    return (x2 - 1.0) * jnp.exp(-0.5 * x2)


def _morlet_base(x):
    return jnp.exp(-0.5 * x * x) * jnp.cos(5.0 * x)


def _dog_base(x):
    return -x * jnp.exp(-0.5 * x * x)


def _meyer_base(x):
    v = jnp.abs(x)
    t = 2.0 * v - 1.0
    nu = t ** 4 * (35.0 - 84.0 * t + 70.0 * t ** 2 - 20.0 * t ** 3)
    aux = jnp.where(v <= 0.5, jnp.ones_like(v),
                    jnp.where(v >= 1.0, jnp.zeros_like(v),
                              jnp.cos(math.pi / 2.0 * nu)))
    return jnp.sin(math.pi * v) * aux


# TODO(synk): 'shannon' needs a hamming window over the in-channel axis of the
# expanded tensor; it is not wired into this fused formulation.
_WAVELETS = {
    "mexican_hat": (_mexican_hat_base, _MH_CONST),
    "morlet": (_morlet_base, 1.0),
    "dog": (_dog_base, 1.0),
    "meyer": (_meyer_base, 1.0),
}


def _apply_wavelet(x, wavelet_type):
    fn, const = _WAVELETS[wavelet_type]
    return const * fn(x)


# ---------------------------------------------------------------------------
# Kernel 1: fused scale/translate + wavelet, de-duplicated over (kh, kw).
#   x_ref:     (1, C, TQ)   f32   (lane axis = flattened H*W pixels)
#   inv_s/nts: (O, C, 1)    f32   (per-(o,c) scalars, broadcast over pixels)
#   wav_ref:   (1, O, C, TQ)      bf16 (or f32)
# ---------------------------------------------------------------------------
def _make_wavelet_kernel(wavelet_type):
    base_fn, _ = _WAVELETS[wavelet_type]

    def kernel(x_ref, inv_s_ref, nts_ref, wav_ref):
        x = x_ref[0]                                            # (C, TQ) f32
        # (x - t)/s  ==  x * (1/s) + (-t/s)   -- no per-element divide.
        xs = x[None, :, :] * inv_s_ref[...] + nts_ref[...]      # (O, C, TQ) f32
        wav_ref[0] = base_fn(xs).astype(wav_ref.dtype)          # const folded into Wc

    return kernel


# ---------------------------------------------------------------------------
# Kernel 2: fused grouped Conv3d + 1x1 Conv2d as a single MXU matmul.
#   cols_ref: (1, R, TP)  bf16    R = O*C*kH*kW (contraction), TP lane-dense
#   wc_ref:   (O, R)      bf16    Wc[o', (o,c,kh,kw)] = w1[o',o] * w3[o,0,c,kh,kw]
#   out_ref:  (1, O, TP)  f32
# ---------------------------------------------------------------------------
def _conv_matmul_kernel(cols_ref, wc_ref, out_ref):
    out_ref[0] = jnp.dot(wc_ref[...], cols_ref[0],
                         preferred_element_type=jnp.float32).astype(out_ref.dtype)


# ---------------------------------------------------------------------------
# Tile sizing (keep the double-buffered working set well inside scoped VMEM:
# default 16 MiB on v5e, 32 MiB on v6e/v7x; v7x has only 64 MiB physical).
# ---------------------------------------------------------------------------
_VMEM_BUDGET = 8 * 1024 * 1024  # conservative, fits every generation's default


def _pick_q_tile(Q, C, O, wav_bytes):
    per_col = 2 * (C * 4 + O * C * wav_bytes)        # double-buffered in + out columns
    cap = max(128, (_VMEM_BUDGET // per_col) // 128 * 128)
    return Q if Q <= cap else cap


def _pick_p_tile(P, R, wav_bytes):
    per_col = 2 * (R * wav_bytes + 8 * 4)            # double-buffered cols + out columns
    cap = max(128, (_VMEM_BUDGET // per_col) // 128 * 128)
    return P if P <= cap else cap


# ---------------------------------------------------------------------------
# Wrapper
# ---------------------------------------------------------------------------
def wavelet_conv_fast_plus_one(x, scale, translation, w3, w1, *,
                               stride=1, padding=1, dilation=1,
                               wavelet_type="mexican_hat",
                               matmul_dtype=jnp.bfloat16):
    """x: (N, C, H, W).  scale/translation: (1, O, C, 1, 1).
    w3: (O, 1, C, kH, kW) grouped Conv3d weight.  w1: (O, O, 1, 1) 1x1 Conv2d weight."""
    N, C, H, W = x.shape
    O = w3.shape[0]
    kH, kW = w3.shape[3], w3.shape[4]
    _, wav_const = _WAVELETS[wavelet_type]

    Ho = (H + 2 * padding - dilation * (kH - 1) - 1) // stride + 1
    Wo = (W + 2 * padding - dilation * (kW - 1) - 1) // stride + 1
    Q = H * W
    P = Ho * Wo
    K = C * kH * kW
    R = O * K
    wav_bytes = jnp.dtype(matmul_dtype).itemsize

    # ---- parameter prep (tiny, done once in the wrapper) ----
    # NOTE: no epsilon guard on scale, matching the PyTorch module.
    inv_s = (1.0 / scale).reshape(O, C, 1).astype(jnp.float32)
    nts = (-translation / scale).reshape(O, C, 1).astype(jnp.float32)
    w1_2d = w1.reshape(O, O).astype(jnp.float32)
    w3_flat = w3.reshape(O, K).astype(jnp.float32)          # K ordered (c, kh, kw)
    wc = (w1_2d[:, :, None] * w3_flat[None, :, :]).reshape(O, R)
    wc = (wav_const * wc).astype(matmul_dtype)               # fold wavelet norm constant

    # ---- stage 1: wavelet kernel (lane-dense pixels, no kH*kW replication) ----
    TQ = _pick_q_tile(Q, C, O, wav_bytes)
    x_flat = x.reshape(N, C, Q).astype(jnp.float32)
    wav = pl.pallas_call(
        _make_wavelet_kernel(wavelet_type),
        out_shape=jax.ShapeDtypeStruct((N, O, C, Q), matmul_dtype),
        grid=(N, pl.cdiv(Q, TQ)),
        in_specs=[
            pl.BlockSpec((1, C, TQ), lambda n, q: (n, 0, q)),
            pl.BlockSpec((O, C, 1), lambda n, q: (0, 0, 0)),
            pl.BlockSpec((O, C, 1), lambda n, q: (0, 0, 0)),
        ],
        out_specs=pl.BlockSpec((1, O, C, TQ), lambda n, q: (n, 0, 0, q)),
        compiler_params=pltpu.CompilerParams(
            dimension_semantics=("parallel", "parallel")),
    )(x_flat, inv_s, nts)

    # ---- stage 2 (glue, pure data movement): pad the WAVELET output with zeros
    #      (matches Conv3d padding semantics) and im2col-shift it.
    wav4 = wav.reshape(N, O * C, H, W)
    wavp = jnp.pad(wav4, ((0, 0), (0, 0), (padding, padding), (padding, padding)))
    cols = []
    for kh in range(kH):
        for kw in range(kW):
            sl = wavp[:, :,
                      kh * dilation: kh * dilation + stride * (Ho - 1) + 1: stride,
                      kw * dilation: kw * dilation + stride * (Wo - 1) + 1: stride]
            cols.append(sl.reshape(N, O * C, P))              # (N, O*C, P)
    # r = (o*C + c)*kH*kW + kh*kW + kw  == o*K + c*kH*kW + kh*kW + kw  (matches Wc)
    wav_cols = jnp.stack(cols, axis=2).reshape(N, R, P)

    # ---- stage 3: fused grouped-conv + 1x1-conv as one MXU matmul ----
    TP = _pick_p_tile(P, R, wav_bytes)
    out_flat = pl.pallas_call(
        _conv_matmul_kernel,
        out_shape=jax.ShapeDtypeStruct((N, O, P), jnp.float32),
        grid=(N, pl.cdiv(P, TP)),
        in_specs=[
            pl.BlockSpec((1, R, TP), lambda n, p: (n, 0, p)),
            pl.BlockSpec((O, R), lambda n, p: (0, 0)),
        ],
        out_specs=pl.BlockSpec((1, O, TP), lambda n, p: (n, 0, p)),
        compiler_params=pltpu.CompilerParams(
            dimension_semantics=("parallel", "parallel")),
    )(wav_cols, wc)

    return out_flat.reshape(N, O, Ho, Wo)


# ---------------------------------------------------------------------------
# Pure-JAX f32 reference (mirrors the PyTorch forward exactly)
# ---------------------------------------------------------------------------
def reference(x, scale, translation, w3, w1, *, stride=1, padding=1, dilation=1,
              wavelet_type="mexican_hat"):
    N, C, H, W = x.shape
    O = w3.shape[0]
    kH, kW = w3.shape[3], w3.shape[4]
    Ho = (H + 2 * padding - dilation * (kH - 1) - 1) // stride + 1
    Wo = (W + 2 * padding - dilation * (kW - 1) - 1) // stride + 1

    xs = (x[:, None] - translation) / scale                   # (N, O, C, H, W)
    wav = _apply_wavelet(xs, wavelet_type)
    # Conv3d pads the wavelet tensor (its input) with zeros:
    wavp = jnp.pad(wav, ((0, 0), (0, 0), (0, 0),
                         (padding, padding), (padding, padding)))

    y = jnp.zeros((N, O, Ho, Wo), jnp.float32)
    for kh in range(kH):
        for kw in range(kW):
            sl = wavp[:, :, :,
                      kh * dilation: kh * dilation + stride * (Ho - 1) + 1: stride,
                      kw * dilation: kw * dilation + stride * (Wo - 1) + 1: stride]
            y = y + jnp.einsum("nochw,oc->nohw", sl, w3[:, 0, :, kh, kw])
    out = jnp.einsum("po,nohw->nphw", w1[:, :, 0, 0], y)
    return out


# ---------------------------------------------------------------------------
if __name__ == "__main__":
    # Module config: ndim=2, in_channels=4, out_channels=8, kernel_size=3,
    # stride=1, padding=1, dilation=1, wavelet_type='mexican_hat'.
    N, C_in, O = 2, 4, 8
    H = W = 16
    kH = kW = 3
    stride, padding, dilation = 1, 1, 1

    key = jax.random.PRNGKey(0)
    kx, kw3, kw1 = jax.random.split(key, 3)

    x = jax.random.normal(kx, (N, C_in, H, W), jnp.float32)

    # Parameters (deterministic init mirroring the module's __init__):
    scale = jnp.ones((1, O, C_in, 1, 1), jnp.float32)          # nn.Parameter(torch.ones)
    translation = jnp.zeros((1, O, C_in, 1, 1), jnp.float32)   # nn.Parameter(torch.zeros)

    # kaiming_uniform_(nonlinearity='linear'): bound = sqrt(3) / sqrt(fan_in)
    fan_in_w3 = 1 * C_in * kH * kW
    bound_w3 = math.sqrt(3.0) / math.sqrt(fan_in_w3)
    w3 = jax.random.uniform(kw3, (O, 1, C_in, kH, kW), jnp.float32,
                            minval=-bound_w3, maxval=bound_w3)

    fan_in_w1 = O * 1 * 1
    bound_w1 = math.sqrt(3.0) / math.sqrt(fan_in_w1)
    w1 = jax.random.uniform(kw1, (O, O, 1, 1), jnp.float32,
                            minval=-bound_w1, maxval=bound_w1)

    fwd = jax.jit(functools.partial(
        wavelet_conv_fast_plus_one,
        stride=stride, padding=padding, dilation=dilation,
        wavelet_type="mexican_hat"))
    out = jax.block_until_ready(fwd(x, scale, translation, w3, w1))

    ref = jax.block_until_ready(
        reference(x, scale, translation, w3, w1,
                  stride=stride, padding=padding, dilation=dilation,
                  wavelet_type="mexican_hat"))

    assert out.shape == (N, O, H, W), out.shape
    # Tolerance sized for bf16 matmul inputs (f32 accumulation over R=288 terms):
    # expected max abs error ~5e-3 for these magnitudes.  Passing
    # matmul_dtype=jnp.float32 to the wrapper brings it below 1e-5.
    max_err = float(jnp.max(jnp.abs(out - ref)))
    assert jnp.allclose(out, ref, rtol=3e-2, atol=3e-2), max_err
    print("KERNEL_OK")
</pallas_src>

<mosaic_0001>
module attributes {stable_mosaic.version = 11 : i64} {
  func.func @kernel(%arg0: i32, %arg1: i32, %arg2: memref<1x4x256xf32, #tpu.memory_space<vmem>>, %arg3: memref<8x4x1xf32, #tpu.memory_space<vmem>>, %arg4: memref<8x4x1xf32, #tpu.memory_space<vmem>>, %arg5: memref<1x8x4x256xbf16, #tpu.memory_space<vmem>>) attributes {dimension_semantics = [#tpu.dimension_semantics<parallel>, #tpu.dimension_semantics<parallel>], iteration_bounds = array<i64: 2, 1>, scalar_prefetch = 0 : i64, scratch_operands = 0 : i64, tpu.core_type = #tpu.core_type<tc>, window_params = [{transform_indices = @transform_0, window_bounds = array<i64: 1, 4, 256>}, {pipeline_mode = #tpu.pipeline_mode<synchronous>, transform_indices = @transform_1, window_bounds = array<i64: 8, 4, 1>}, {pipeline_mode = #tpu.pipeline_mode<synchronous>, transform_indices = @transform_2, window_bounds = array<i64: 8, 4, 1>}, {transform_indices = @transform_3, window_bounds = array<i64: 1, 8, 4, 256>}]} {
    %c0 = arith.constant 0 : index
    %c0_0 = arith.constant 0 : index
    %c0_1 = arith.constant 0 : index
    %0 = vector.load %arg2[%c0, %c0_0, %c0_1] : memref<1x4x256xf32, #tpu.memory_space<vmem>>, vector<1x4x256xf32>
    %1 = vector.shape_cast %0 : vector<1x4x256xf32> to vector<4x256xf32>
    %2 = vector.shape_cast %1 : vector<4x256xf32> to vector<1x4x256xf32>
    %c0_2 = arith.constant 0 : index
    %c0_3 = arith.constant 0 : index
    %c0_4 = arith.constant 0 : index
    %3 = vector.load %arg3[%c0_2, %c0_3, %c0_4] : memref<8x4x1xf32, #tpu.memory_space<vmem>>, vector<8x4x1xf32>
    %4 = vector.broadcast %2 : vector<1x4x256xf32> to vector<8x4x256xf32>
    %5 = vector.broadcast %3 : vector<8x4x1xf32> to vector<8x4x256xf32>
    %6 = arith.mulf %4, %5 : vector<8x4x256xf32>
    %c0_5 = arith.constant 0 : index
    %c0_6 = arith.constant 0 : index
    %c0_7 = arith.constant 0 : index
    %7 = vector.load %arg4[%c0_5, %c0_6, %c0_7] : memref<8x4x1xf32, #tpu.memory_space<vmem>>, vector<8x4x1xf32>
    %8 = vector.broadcast %7 : vector<8x4x1xf32> to vector<8x4x256xf32>
    %9 = arith.addf %6, %8 : vector<8x4x256xf32>
    %10 = arith.mulf %9, %9 : vector<8x4x256xf32>
    %cst = arith.constant 1.000000e+00 : f32
    %11 = vector.broadcast %cst : f32 to vector<8x4x256xf32>
    %12 = arith.subf %10, %11 : vector<8x4x256xf32>
    %cst_8 = arith.constant -5.000000e-01 : f32
    %13 = vector.broadcast %cst_8 : f32 to vector<8x4x256xf32>
    %14 = arith.mulf %13, %10 : vector<8x4x256xf32>
    %15 = math.exp %14 : vector<8x4x256xf32>
    %16 = arith.mulf %12, %15 : vector<8x4x256xf32>
    %17 = arith.truncf %16 : vector<8x4x256xf32> to vector<8x4x256xbf16>
    %c0_9 = arith.constant 0 : index
    %c0_10 = arith.constant 0 : index
    %c0_11 = arith.constant 0 : index
    %c0_12 = arith.constant 0 : index
    %18 = vector.load %arg5[%c0_9, %c0_10, %c0_11, %c0_12] : memref<1x8x4x256xbf16, #tpu.memory_space<vmem>>, vector<1x8x4x256xbf16>
    %19 = vector.shape_cast %18 : vector<1x8x4x256xbf16> to vector<8x4x256xbf16>
    %20 = vector.shape_cast %17 : vector<8x4x256xbf16> to vector<1x8x4x256xbf16>
    tpu.vector_store %arg5[%c0_9, %c0_10, %c0_11, %c0_12], %20 {strides = array<i32>} : memref<1x8x4x256xbf16, #tpu.memory_space<vmem>>, vector<1x8x4x256xbf16>,
    return
  }
  func.func @transform_0(%arg0: i32, %arg1: i32) -> (i32, i32, i32) {
    %c0_i32 = arith.constant 0 : i32
    %c0_i32_0 = arith.constant 0 : i32
    return %arg0, %c0_i32, %arg1 : i32, i32, i32
  }
  func.func @transform_1(%arg0: i32, %arg1: i32) -> (i32, i32, i32) {
    %c0_i32 = arith.constant 0 : i32
    %c0_i32_0 = arith.constant 0 : i32
    %c0_i32_1 = arith.constant 0 : i32
    %c0_i32_2 = arith.constant 0 : i32
    return %c0_i32, %c0_i32_0, %c0_i32_1 : i32, i32, i32
  }
  func.func @transform_2(%arg0: i32, %arg1: i32) -> (i32, i32, i32) {
    %c0_i32 = arith.constant 0 : i32
    %c0_i32_0 = arith.constant 0 : i32
    %c0_i32_1 = arith.constant 0 : i32
    %c0_i32_2 = arith.constant 0 : i32
    return %c0_i32, %c0_i32_0, %c0_i32_1 : i32, i32, i32
  }
  func.func @transform_3(%arg0: i32, %arg1: i32) -> (i32, i32, i32, i32) {
    %c0_i32 = arith.constant 0 : i32
    %c0_i32_0 = arith.constant 0 : i32
    %c0_i32_1 = arith.constant 0 : i32
    return %arg0, %c0_i32, %c0_i32_0, %arg1 : i32, i32, i32, i32
  }
}

module attributes {stable_mosaic.version = 11 : i64} {
  func.func @_conv_matmul_kernel(%arg0: i32, %arg1: i32, %arg2: memref<1x288x256xbf16, #tpu.memory_space<vmem>>, %arg3: memref<8x288xbf16, #tpu.memory_space<vmem>>, %arg4: memref<1x8x256xf32, #tpu.memory_space<vmem>>) attributes {dimension_semantics = [#tpu.dimension_semantics<parallel>, #tpu.dimension_semantics<parallel>], iteration_bounds = array<i64: 2, 1>, scalar_prefetch = 0 : i64, scratch_operands = 0 : i64, tpu.core_type = #tpu.core_type<tc>, window_params = [{transform_indices = @transform_0, window_bounds = array<i64: 1, 288, 256>}, {pipeline_mode = #tpu.pipeline_mode<synchronous>, transform_indices = @transform_1, window_bounds = array<i64: 8, 288>}, {transform_indices = @transform_2, window_bounds = array<i64: 1, 8, 256>}]} {
    %c0 = arith.constant 0 : index
    %c0_0 = arith.constant 0 : index
    %0 = vector.load %arg3[%c0, %c0_0] : memref<8x288xbf16, #tpu.memory_space<vmem>>, vector<8x288xbf16>
    %c0_1 = arith.constant 0 : index
    %c0_2 = arith.constant 0 : index
    %c0_3 = arith.constant 0 : index
    %1 = vector.load %arg2[%c0_1, %c0_2, %c0_3] : memref<1x288x256xbf16, #tpu.memory_space<vmem>>, vector<1x288x256xbf16>
    %2 = vector.shape_cast %1 : vector<1x288x256xbf16> to vector<288x256xbf16>
    %cst = arith.constant dense<0.000000e+00> : vector<8x256xf32>
    %3 = tpu.matmul %0, %2, %cst {dimension_numbers = #tpu.dot_dimension_numbers<[1], [0], [0], [1], [0, 0, 1, 1], [], []>} : vector<8x288xbf16>, vector<288x256xbf16>, vector<8x256xf32> -> vector<8x256xf32>
    %c0_4 = arith.constant 0 : index
    %c0_5 = arith.constant 0 : index
    %c0_6 = arith.constant 0 : index
    %4 = vector.load %arg4[%c0_4, %c0_5, %c0_6] : memref<1x8x256xf32, #tpu.memory_space<vmem>>, vector<1x8x256xf32>
    %5 = vector.shape_cast %4 : vector<1x8x256xf32> to vector<8x256xf32>
    %6 = vector.shape_cast %3 : vector<8x256xf32> to vector<1x8x256xf32>
    tpu.vector_store %arg4[%c0_4, %c0_5, %c0_6], %6 {strides = array<i32>} : memref<1x8x256xf32, #tpu.memory_space<vmem>>, vector<1x8x256xf32>,
    return
  }
  func.func @transform_0(%arg0: i32, %arg1: i32) -> (i32, i32, i32) {
    %c0_i32 = arith.constant 0 : i32
    %c0_i32_0 = arith.constant 0 : i32
    return %arg0, %c0_i32, %arg1 : i32, i32, i32
  }
  func.func @transform_1(%arg0: i32, %arg1: i32) -> (i32, i32) {
    %c0_i32 = arith.constant 0 : i32
    %c0_i32_0 = arith.constant 0 : i32
    %c0_i32_1 = arith.constant 0 : i32
    return %c0_i32, %c0_i32_0 : i32, i32
  }
  func.func @transform_2(%arg0: i32, %arg1: i32) -> (i32, i32, i32) {
    %c0_i32 = arith.constant 0 : i32
    %c0_i32_0 = arith.constant 0 : i32
    return %arg0, %c0_i32, %arg1 : i32, i32, i32
  }
}

</mosaic_0001>

<bundles_post_ra>
// kernel: wavelet_conv_fast_plus_one.2
= control target key start
LH: loop header
LB: loop body
LE: loop exit
PB: predicated region body
PF: predicated region fallthrough
CT: control target
= control target key end

     0   :  { %s750_s12 = smov 0   ;;  %s752_s13 = smov 0   ;;  %s888_s0 = inlined_call_operand.vmem [shape: f32[2,4,256], index: 0, kind: input, shape index: {}]   ;;  %s889_s1 = inlined_call_operand.vmem [shape: f32[8,4,1], index: 1, kind: input, shape index: {}]   ;;  %s890_s2 = inlined_call_operand.vmem [shape: f32[8,4,1], index: 2, kind: input, shape index: {}]   ;;  %s891_s3 = inlined_call_operand.vmem [shape: bf16[2,8,4,256], index: 3, kind: output, shape index: {}]  }
   0x1   :  { %s754_s14 = smov 0  }
   0x2 LB: > { %s25_s15 = sadd.s32 1, %s722_s13  ;;  %p642_p0 = scmp.ge.s32.totalorder %s726_s14, 1  ;;  %s726_s14 = sphi %s754_s14, %s13_s14   ;;  %s722_s13 = sphi %s752_s13, %s893_s13   ;;  %s718_s12 = sphi %s750_s12, %s892_s12  }
   0x3   : > { %p27_p1 = scmp.ge.s32.totalorder %s25_s15, 2  ;;  %p158_p2 = scmp.lt.s32.totalorder %s726_s14, 3 }
   0x5   : > { %s895_s15 = smov (%p27_p1, %s25_s15), 0  ;;  %p159_p3 = pnand %p642_p0, %p158_p2 }
   0x6   : > { %p191_p4 = scmp.lt.s32.totalorder (!%p159_p3), %s718_s12, 1 }
   0x7   : > { %162 = sbr.rel (%p159_p3) target bundleno = 204 (0xcc), region = 32 }
   0xc   : > { %v299_v0 = vld [vmem:[%s890_s2] sm:$0xf]  ;;  %v213_v1 = vld [vmem:[%s889_s1 + $0x8] sm:$0xf]  ;;  %v728_v2 = vmov 0   ;;  %s897_s12 = smov (!%p191_p4, %s718_s12), 1 }
   0xd   : > { %687 = vset.pattern.permute.xlu2 %v728_v2  ;;  %686 = vset.pattern.permute.xlu1 %v728_v2  ;;  %v211_v3 = vld [vmem:[%s889_s1] sm:$0xf]  ;;  %v300_v4 = vld [vmem:[%s890_s2 + $0x4] sm:$0xf]  ;;  %v214_v5 = vld [vmem:[%s889_s1 + $0xc] sm:$0xf] }
   0xe   : > { %685 = vset.pattern.permute.xlu0 %v728_v2  ;;  %309 = vperm.xlu2 %687, %v299_v0   ;;  %v212_v6 = vld [vmem:[%s889_s1 + $0x4] sm:$0xf]  ;;  %v215_v7 = vld [vmem:[%s889_s1 + $0x10] sm:$0xf]  ;;  %v302_v8 = vld [vmem:[%s890_s2 + $0xc] sm:$0xf] }
   0xf   : > { %229 = vperm.xlu1 %686, %v213_v1   ;;  %221 = vperm.xlu0 %685, %v211_v3   ;;  %v301_v9 = vld [vmem:[%s890_s2 + $0x8] sm:$0xf]  ;;  %v218_v10 = vld [vmem:[%s889_s1 + $0x1c] sm:$0xf]  ;;  %v217_v11 = vld [vmem:[%s889_s1 + $0x18] sm:$0xf] }
  0x10   : > { %v216_v12 = vld [vmem:[%s889_s1 + $0x14] sm:$0xf]  ;;  %v305_v13 = vld [vmem:[%s890_s2 + $0x18] sm:$0xf]  ;;  %v303_v15 = vld [vmem:[%s890_s2 + $0x10] sm:$0xf] }
  0x11   : > { %v304_v14 = vld [vmem:[%s890_s2 + $0x14] sm:$0xf]  ;;  %v306_v16 = vld [vmem:[%s890_s2 + $0x1c] sm:$0xf]  ;;  %v729_v18 = vmov 839922192  }
  0x12   : > { %v252_v19 = vunpack.c.l.s4 %v729_v18  ;;  %s657_s25 = sshll.u32 %s897_s12, 3  ;;  %s658_s29 = sshll.u32 %s897_s12, 5  ;;  %vm510_vm0 = vcmask 1041408  }
  0x13   : > { %s198_s28 = scalar_lea.vmem %s888_s0, %s657_s25  ;;  %s853_s5 = scalar_lea.vmem %s891_s3, %s658_s29 }
  0x14   : > { %v823_v21 = vunpack.c.0.s8 %v252_v19  ;;  %v828_v22 = vld [vmem:[%s198_s28] sm:$0xff] }
  0x16   : > { %313 = vperm.xlu2 %687, %v300_v4  }
  0x17   : > { %233 = vperm.xlu1 %686, %v214_v5   ;;  %225 = vperm.xlu0 %685, %v212_v6  }
  0x1e   : > { %237 = vperm.xlu2 %687, %v215_v7  }
  0x1f   : > { %321 = vperm.xlu1 %686, %v302_v8   ;;  %317 = vperm.xlu0 %685, %v301_v9  }
  0x26   : > { %249 = vperm.xlu2 %687, %v218_v10  }
  0x27   : > { %245 = vperm.xlu1 %686, %v217_v11   ;;  %241 = vperm.xlu0 %685, %v216_v12  }
  0x2e   : > { %333 = vperm.xlu2 %687, %v305_v13  }
  0x2f   : > { %329 = vperm.xlu1 %686, %v304_v14   ;;  %325 = vperm.xlu0 %685, %v303_v15  }
  0x37   : > { %337 = vperm.xlu0 %685, %v306_v16  }
  0x68   : > { %v310_v17 = vpop.permute.xlu2 %309 }
  0x69   : > { %v342_v25 = vperm.slane %v310_v17, %v823_v21 }
  0x70   : > { %v314_v20 = vpop.permute.xlu2 %313 }
  0x71   : > { %v346_v35 = vperm.slane %v314_v20, %v823_v21 }
  0x78   : > { %v238_v27 = vpop.permute.xlu2 %237 }
  0x79   : > { %v270_v6 = vperm.slane %v238_v27, %v823_v21 }
  0x7b   : > { %v295_v14 = vmul.f32 %v270_v6, %v828_v22 }
  0x80   : > { %v837_v39 = vpop.permute.xlu2 %249 }
  0x81   : > { %v230_v23 = vpop.permute.xlu1 %229  ;;  %v222_v24 = vpop.permute.xlu0 %221 }
  0x82   : > { %v254_v26 = vperm.slane %v222_v24, %v823_v21  ;;  %v262_v38 = vperm.slane %v230_v23, %v823_v21 }
  0x84   : > { %v291_v28 = vmul.f32 %v254_v26, %v828_v22  ;;  %v293_v43 = vmul.f32 %v262_v38, %v828_v22 }
  0x86   : > { %v379_v29 = vadd.f32 %v342_v25, %v291_v28 }
  0x88   : > { %v387_v30 = vmul.f32 %v379_v29, %v379_v29  ;;  %v334_v58 = vpop.permute.xlu2 %333 }
  0x89   : > { %v234_v31 = vpop.permute.xlu1 %233  ;;  %v226_v32 = vpop.permute.xlu0 %225  ;;  %v366_v4 = vperm.slane %v334_v58, %v823_v21 }
  0x8a   : > { %v403_v33 = vmul.f32 -0.5, %v387_v30  ;;  %v258_v34 = vperm.slane %v226_v32, %v823_v21  ;;  %v266_v40 = vperm.slane %v234_v31, %v823_v21  ;;  %v647_v50 = vadd.f32 -1.0, %v387_v30 }
  0x8c   : > { %v411_v36 = vmul.f32 1.442695, %v403_v33  ;;  %v292_v37 = vmul.f32 %v258_v34, %v828_v22  ;;  %v294_v46 = vmul.f32 %v266_v40, %v828_v22  ;;  %v282_v34 = vperm.slane %v837_v39, %v823_v21 }
  0x8e   : > { %688 = vpow2.f32 %v411_v36  ;;  %v380_v41 = vadd.f32 %v346_v35, %v292_v37 }
  0x90   : > { %v388_v42 = vmul.f32 %v380_v41, %v380_v41 }
  0x91   : > { %v322_v44 = vpop.permute.xlu1 %321  ;;  %v318_v45 = vpop.permute.xlu0 %317 }
  0x92   : > { %v404_v47 = vmul.f32 -0.5, %v388_v42  ;;  %v354_v48 = vperm.slane %v322_v44, %v823_v21  ;;  %v350_v49 = vperm.slane %v318_v45, %v823_v21  ;;  %v648_v2 = vadd.f32 -1.0, %v388_v42 }
  0x93   : > { %v298_v44 = vmul.f32 %v282_v34, %v828_v22 }
  0x94   : > { %v689_v51 = vpop.eup %688  ;;  %v413_v52 = vmul.f32 1.442695, %v404_v47  ;;  %v382_v53 = vadd.f32 %v354_v48, %v294_v46  ;;  %v381_v54 = vadd.f32 %v350_v49, %v293_v43 }
  0x95   : > { %v427_v55 = vmul.f32 %v689_v51, %v647_v50 }
  0x96   : > { %690 = vpow2.f32 %v413_v52  ;;  %v390_v56 = vmul.f32 %v382_v53, %v382_v53  ;;  %v389_v57 = vmul.f32 %v381_v54, %v381_v54 }
  0x97   : > { %443 = vst [vmem:[#allocation1] ss:$2 sm:$0xff] %v427_v55 }
  0x98   : > { %v406_v59 = vmul.f32 -0.5, %v390_v56  ;;  %v405_v60 = vmul.f32 -0.5, %v389_v57  ;;  %v650_v15 = vadd.f32 -1.0, %v390_v56  ;;  %v649_v16 = vadd.f32 -1.0, %v389_v57 }
  0x99   : > { %v246_v61 = vpop.permute.xlu1 %245  ;;  %v242_v62 = vpop.permute.xlu0 %241 }
  0x9a   : > { %v417_v63 = vmul.f32 1.442695, %v406_v59  ;;  %v415_v0 = vmul.f32 1.442695, %v405_v60  ;;  %v278_v1 = vperm.slane %v246_v61, %v823_v21  ;;  %v274_v9 = vperm.slane %v242_v62, %v823_v21 }
  0x9c   : > { %v691_v3 = vpop.eup %690  ;;  %692 = vpow2.f32 %v417_v63  ;;  %v297_v5 = vmul.f32 %v278_v1, %v828_v22  ;;  %v296_v24 = vmul.f32 %v274_v9, %v828_v22 }
  0x9d   : > { %v428_v7 = vmul.f32 %v691_v3, %v648_v2  ;;  %694 = vpow2.f32 %v415_v0 }
  0x9e   : > { %v385_v8 = vadd.f32 %v366_v4, %v297_v5  ;;  %v444_v10 = vld.sshfl [vmem:[#allocation1] sm:$0xff pattern:$0x75316420]  ;;  %v445_v11 = vld.sshfl [vmem:[#allocation1 + $0x8] sm:$0xff pattern:$0x75316420] }
  0x9f   : > { %447 = vst [vmem:[#allocation1 + $0x10] ss:$2 sm:$0xff] %v428_v7  ;;  %v486_v12 = vpack.c.bf16 %v445_v11, %v444_v10 }
  0xa0   : > { %v393_v13 = vmul.f32 %v385_v8, %v385_v8 }
  0xa1   : > { %v330_v17 = vpop.permute.xlu1 %329  ;;  %v326_v18 = vpop.permute.xlu0 %325  ;;  %v502_v19 = vrot.slane %v486_v12, 2 }
  0xa2   : > { %v693_v20 = vpop.eup %692  ;;  %v409_v23 = vmul.f32 -0.5, %v393_v13  ;;  %v362_v25 = vperm.slane %v330_v17, %v823_v21  ;;  %v358_v26 = vperm.slane %v326_v18, %v823_v21  ;;  %v653_v48 = vadd.f32 -1.0, %v393_v13 }
  0xa3   : > { %v695_v27 = vpop.eup %694  ;;  %v430_v28 = vmul.f32 %v693_v20, %v650_v15  ;;  %v513_v29 = vsel %vm510_vm0, %v486_v12, %v502_v19 }
  0xa4   : > { %v429_v30 = vmul.f32 %v695_v27, %v649_v16  ;;  %v423_v31 = vmul.f32 1.442695, %v409_v23  ;;  %v384_v32 = vadd.f32 %v362_v25, %v296_v24  ;;  %v383_v33 = vadd.f32 %v358_v26, %v295_v14  ;;  %543 = vst [vmem:[%s853_s5] sm:$0xf] %v513_v29 }
  0xa5   : > { %455 = vst [vmem:[#allocation1 + $0x30] ss:$2 sm:$0xff] %v430_v28 }
  0xa6   : > { %451 = vst [vmem:[#allocation1 + $0x20] ss:$2 sm:$0xff] %v429_v30  ;;  %696 = vpow2.f32 %v423_v31  ;;  %v392_v35 = vmul.f32 %v384_v32, %v384_v32  ;;  %v448_v36 = vld.sshfl [vmem:[#allocation1 + $0x10] sm:$0xff pattern:$0x75316420]  ;;  %v391_v37 = vmul.f32 %v383_v33, %v383_v33 }
  0xa7   : > { %v449_v38 = vld.sshfl [vmem:[#allocation1 + $0x18] sm:$0xff pattern:$0x75316420] }
  0xa8   : > { %v408_v40 = vmul.f32 -0.5, %v392_v35  ;;  %v487_v41 = vpack.c.bf16 %v449_v38, %v448_v36  ;;  %v407_v42 = vmul.f32 -0.5, %v391_v37  ;;  %v652_v61 = vadd.f32 -1.0, %v392_v35 }
  0xa9   : > { %v338_v43 = vpop.permute.xlu0 %337  ;;  %v651_v1 = vadd.f32 -1.0, %v391_v37 }
  0xaa   : > { %v421_v45 = vmul.f32 1.442695, %v408_v40  ;;  %v503_v46 = vrot.slane %v487_v41, 2  ;;  %v370_v47 = vperm.slane %v338_v43, %v823_v21  ;;  %v419_v49 = vmul.f32 1.442695, %v407_v42 }
  0xac   : > { %v697_v39 = vpop.eup %696  ;;  %698 = vpow2.f32 %v421_v45  ;;  %v516_v50 = vsel %vm510_vm0, %v487_v41, %v503_v46  ;;  %v386_v51 = vadd.f32 %v370_v47, %v298_v44  ;;  %v456_v52 = vld.sshfl [vmem:[#allocation1 + $0x30] sm:$0xff pattern:$0x75316420]  ;;  %v457_v53 = vld.sshfl [vmem:[#allocation1 + $0x38] sm:$0xff pattern:$0x75316420] }
  0xad   : > { %v433_v54 = vmul.f32 %v697_v39, %v653_v48  ;;  %v452_v55 = vld.sshfl [vmem:[#allocation1 + $0x20] sm:$0xff pattern:$0x75316420]  ;;  %v453_v56 = vld.sshfl [vmem:[#allocation1 + $0x28] sm:$0xff pattern:$0x75316420]  ;;  %700 = vpow2.f32 %v419_v49  ;;  %v489_v22 = vpack.c.bf16 %v457_v53, %v456_v52 }
  0xae   : > { %v488_v57 = vpack.c.bf16 %v453_v56, %v452_v55  ;;  %544 = vst [vmem:[%s853_s5 + $0x4] sm:$0xf] %v516_v50  ;;  %v394_v58 = vmul.f32 %v386_v51, %v386_v51 }
  0xaf   : > { %464 = vst [vmem:[#allocation1 + $0x20] ss:$2 sm:$0xff] %v433_v54  ;;  %v505_v21 = vrot.slane %v489_v22, 2 }
  0xb0   : > { %v504_v59 = vrot.slane %v488_v57, 2  ;;  %v410_v60 = vmul.f32 -0.5, %v394_v58  ;;  %v654_v10 = vadd.f32 -1.0, %v394_v58 }
  0xb1   : > { %v522_v62 = vsel %vm510_vm0, %v489_v22, %v505_v21 }
  0xb2   : > { %v699_v63 = vpop.eup %698  ;;  %v519_v0 = vsel %vm510_vm0, %v488_v57, %v504_v59  ;;  %v425_v2 = vmul.f32 1.442695, %v410_v60  ;;  %546 = vst [vmem:[%s853_s5 + $0xc] sm:$0xf] %v522_v62 }
  0xb3   : > { %v701_v3 = vpop.eup %700  ;;  %545 = vst [vmem:[%s853_s5 + $0x8] sm:$0xf] %v519_v0  ;;  %v432_v4 = vmul.f32 %v699_v63, %v652_v61 }
  0xb4   : > { %v431_v5 = vmul.f32 %v701_v3, %v651_v1  ;;  %702 = vpow2.f32 %v425_v2 }
  0xb5   : > { %461 = vst [vmem:[#allocation1 + $0x10] ss:$2 sm:$0xff] %v432_v4 }
  0xb6   : > { %v465_v6 = vld.sshfl [vmem:[#allocation1 + $0x20] sm:$0xff pattern:$0x75316420]  ;;  %v466_v7 = vld.sshfl [vmem:[#allocation1 + $0x28] sm:$0xff pattern:$0x75316420] }
  0xb7   : > { %v492_v8 = vpack.c.bf16 %v466_v7, %v465_v6  ;;  %458 = vst [vmem:[#allocation1] ss:$2 sm:$0xff] %v431_v5 }
  0xb9   : > { %v508_v9 = vrot.slane %v492_v8, 2 }
  0xba   : > { %v703_v11 = vpop.eup %702 }
  0xbb   : > { %v531_v12 = vsel %vm510_vm0, %v492_v8, %v508_v9  ;;  %v434_v13 = vmul.f32 %v703_v11, %v654_v10 }
  0xbc   : > { %549 = vst [vmem:[%s853_s5 + $0x18] sm:$0xf] %v531_v12  ;;  %v462_v14 = vld.sshfl [vmem:[#allocation1 + $0x10] sm:$0xff pattern:$0x75316420] }
  0xbd   : > { %v463_v15 = vld.sshfl [vmem:[#allocation1 + $0x18] sm:$0xff pattern:$0x75316420]  ;;  %467 = vst [vmem:[#allocation1 + $0x30] ss:$2 sm:$0xff] %v434_v13 }
  0xbe   : > { %v491_v16 = vpack.c.bf16 %v463_v15, %v462_v14  ;;  %v459_v17 = vld.sshfl [vmem:[#allocation1] sm:$0xff pattern:$0x75316420]  ;;  %v460_v18 = vld.sshfl [vmem:[#allocation1 + $0x8] sm:$0xff pattern:$0x75316420] }
  0xbf   : > { %v490_v19 = vpack.c.bf16 %v460_v18, %v459_v17 }
  0xc0   : > { %v507_v20 = vrot.slane %v491_v16, 2 }
  0xc1   : > { %v506_v23 = vrot.slane %v490_v19, 2 }
  0xc2   : > { %v528_v24 = vsel %vm510_vm0, %v491_v16, %v507_v20 }
  0xc3   : > { %548 = vst [vmem:[%s853_s5 + $0x14] sm:$0xf] %v528_v24  ;;  %v525_v25 = vsel %vm510_vm0, %v490_v19, %v506_v23 }
  0xc4   : > { %547 = vst [vmem:[%s853_s5 + $0x10] sm:$0xf] %v525_v25  ;;  %v468_v26 = vld.sshfl [vmem:[#allocation1 + $0x30] sm:$0xff pattern:$0x75316420] }
  0xc5   : > { %v469_v27 = vld.sshfl [vmem:[#allocation1 + $0x38] sm:$0xff pattern:$0x75316420] }
  0xc6   : > { %v493_v28 = vpack.c.bf16 %v469_v27, %v468_v26 }
  0xc8   : > { %v509_v29 = vrot.slane %v493_v28, 2 }
  0xca   : > { %v534_v30 = vsel %vm510_vm0, %v493_v28, %v509_v29 }
  0xcb   : > { %550 = vst [vmem:[%s853_s5 + $0x1c] sm:$0xf] %v534_v30 }
  0xcc PF: > { %s13_s14 = sadd.s32 1, %s726_s14   ;;  %s892_s12 = smov %s722_s13 }
  0xcd   : > { %p10_p5 = scmp.ge.s32.totalorder %s13_s14, 4   ;;  %s893_s13 = smov %s895_s15 }
  0xcf   :  { %12 = sbr.rel (!%p10_p5) target bundleno = 2 (0x2), region = 65 }

// kernel: wavelet_conv_fast_plus_one.3
= control target key start
LH: loop header
LB: loop body
LE: loop exit
PB: predicated region body
PF: predicated region fallthrough
CT: control target
= control target key end

     0   :  { %s840_s9 = smov 0   ;;  %s842_s10 = smov 0   ;;  %s963_s0 = inlined_call_operand.vmem [shape: bf16[2,288,256], index: 0, kind: input, shape index: {}]   ;;  %s964_s1 = inlined_call_operand.vmem [shape: bf16[8,288], index: 1, kind: input, shape index: {}]   ;;  %s965_s2 = inlined_call_operand.vmem [shape: f32[2,8,256], index: 2, kind: output, shape index: {}]  }
   0x1   :  { %s844_s11 = smov 0  }
   0x2 LB: > { %s24_s12 = sadd.s32 1, %s819_s10  ;;  %p587_p0 = scmp.ge.s32.totalorder %s823_s11, 1  ;;  %s823_s11 = sphi %s844_s11, %s12_s11   ;;  %s819_s10 = sphi %s842_s10, %s967_s10   ;;  %s815_s9 = sphi %s840_s9, %s966_s9  }
   0x3   : > { %p26_p1 = scmp.ge.s32.totalorder %s24_s12, 2  ;;  %p133_p2 = scmp.lt.s32.totalorder %s823_s11, 3 }
   0x5   : > { %s969_s12 = smov (%p26_p1, %s24_s12), 0  ;;  %p134_p3 = pnand %p587_p0, %p133_p2 }
   0x6   : > { %p164_p4 = scmp.lt.s32.totalorder (!%p134_p3), %s815_s9, 1 }
   0x7   : > { %137 = sbr.rel (%p134_p3) target bundleno = 201 (0xc9), region = 28 }
   0xc   : > { %s971_s9 = smov (!%p164_p4, %s815_s9), 1  ;;  %v185_v0 = vld [vmem:[%s964_s1 + $0x8] sm:$0xf]  ;;  %vm412_vm0 = vcmask 261120  }
   0xd   : > { %s776_s13 = smul.u32 288, %s971_s9  ;;  %v226_v17 = vunpack.c.l.b16 %v185_v0  ;;  %s739_s21 = sshll.u32 %s971_s9, 4 }
   0xe   : > { %s181_s24 = scalar_lea.vmem %s965_s2, %s739_s21 }
   0xf   : > { %s864_s16 = scalar_lea.vmem %s963_s0, %s776_s13  ;;  %v893_v36 = vpack.c.b16 %v226_v17, %v226_v17 }
  0x10   : > { %v649_v1 = vld [vmem:[%s864_s16 + $0x70] sm:$0xf]  ;;  %v755_v2 = vld [vmem:[%s864_s16 + $0x74] sm:$0xf0]  ;;  %v754_v10 = vld [vmem:[%s864_s16 + $0x74] sm:$0xf] }
  0x11   : > { %v713_v3 = vld [vmem:[%s864_s16 + $0xf0] sm:$0xf]  ;;  %v650_v4 = vor.u32 %v755_v2, %v649_v1  ;;  %v771_v5 = vld [vmem:[%s864_s16 + $0xf4] sm:$0xf0]  ;;  %v651_v11 = vld [vmem:[%s864_s16 + $0x78] sm:$0xf0] }
  0x12   : > { %v729_v6 = vld [vmem:[%s864_s16 + $0x110] sm:$0xf]  ;;  %v775_v7 = vld [vmem:[%s864_s16 + $0x114] sm:$0xf0]  ;;  %v714_v8 = vor.u32 %v771_v5, %v713_v3  ;;  %v641_v12 = vld [vmem:[%s864_s16 + $0x60] sm:$0xf]  ;;  %v654_v13 = vor.u32 %v754_v10, %v651_v11 }
  0x13   : > { %v730_v9 = vor.u32 %v775_v7, %v729_v6  ;;  %416 = vmatpush.bf16.msra.mxu0 %v650_v4  ;;  %v753_v14 = vld [vmem:[%s864_s16 + $0x64] sm:$0xf0]  ;;  %v705_v15 = vld [vmem:[%s864_s16 + $0xe0] sm:$0xf]  ;;  %v770_v22 = vld [vmem:[%s864_s16 + $0xf4] sm:$0xf] }
  0x14   : > { %v769_v16 = vld [vmem:[%s864_s16 + $0xe4] sm:$0xf0]  ;;  %429 = vmatpush.bf16.msra.mxu1 %v714_v8  ;;  %v642_v18 = vor.u32 %v753_v14, %v641_v12  ;;  %v721_v20 = vld [vmem:[%s864_s16 + $0x100] sm:$0xf]  ;;  %455 = vmatpush.bf16.msra.mxu3 %v654_v13  ;;  %v715_v24 = vld [vmem:[%s864_s16 + $0xf8] sm:$0xf0] }
  0x15   : > { %448 = vmatpush.bf16.msra.mxu2 %v730_v9  ;;  %v706_v19 = vor.u32 %v769_v16, %v705_v15  ;;  %v773_v21 = vld [vmem:[%s864_s16 + $0x104] sm:$0xf0]  ;;  %v752_v25 = vld [vmem:[%s864_s16 + $0x64] sm:$0xf]  ;;  %v643_v26 = vld [vmem:[%s864_s16 + $0x68] sm:$0xf0]  ;;  %v718_v27 = vor.u32 %v770_v22, %v715_v24 }
  0x16   : > { %v722_v23 = vor.u32 %v773_v21, %v721_v20  ;;  %v646_v28 = vor.u32 %v752_v25, %v643_v26  ;;  %v633_v29 = vld [vmem:[%s864_s16 + $0x50] sm:$0xf]  ;;  %v751_v30 = vld [vmem:[%s864_s16 + $0x54] sm:$0xf0]  ;;  %v768_v34 = vld [vmem:[%s864_s16 + $0xe4] sm:$0xf] }
  0x17   : > { %v697_v31 = vld [vmem:[%s864_s16 + $0xd0] sm:$0xf]  ;;  %417 = vmatpush.bf16.msra.mxu0 %v642_v18  ;;  %v634_v32 = vor.u32 %v751_v30, %v633_v29  ;;  %v767_v33 = vld [vmem:[%s864_s16 + $0xd4] sm:$0xf0]  ;;  %v707_v35 = vld [vmem:[%s864_s16 + $0xe8] sm:$0xf0] }
  0x18   : > { %430 = vmatpush.bf16.msra.mxu1 %v706_v19  ;;  %v698_v37 = vor.u32 %v767_v33, %v697_v31  ;;  %v750_v38 = vld [vmem:[%s864_s16 + $0x54] sm:$0xf]  ;;  %v635_v39 = vld [vmem:[%s864_s16 + $0x58] sm:$0xf0]  ;;  %v625_v40 = vld [vmem:[%s864_s16 + $0x40] sm:$0xf]  ;;  %456 = vmatpush.bf16.msra.mxu3 %v646_v28  ;;  %v710_v41 = vor.u32 %v768_v34, %v707_v35 }
  0x19   : > { %449 = vmatpush.bf16.msra.mxu2 %v722_v23  ;;  %v638_v42 = vor.u32 %v750_v38, %v635_v39  ;;  %v749_v43 = vld [vmem:[%s864_s16 + $0x44] sm:$0xf0]  ;;  %v689_v44 = vld [vmem:[%s864_s16 + $0xc0] sm:$0xf]  ;;  %v766_v46 = vld [vmem:[%s864_s16 + $0xd4] sm:$0xf] }
  0x1a   : > { %v765_v45 = vld [vmem:[%s864_s16 + $0xc4] sm:$0xf0]  ;;  %v699_v47 = vld [vmem:[%s864_s16 + $0xd8] sm:$0xf0]  ;;  %v748_v48 = vld [vmem:[%s864_s16 + $0x44] sm:$0xf]  ;;  %v626_v49 = vor.u32 %v749_v43, %v625_v40 }
  0x1b   : > { %418 = vmatpush.bf16.msra.mxu0 %v634_v32  ;;  %v627_v50 = vld [vmem:[%s864_s16 + $0x48] sm:$0xf0]  ;;  %v690_v51 = vor.u32 %v765_v45, %v689_v44  ;;  %v617_v52 = vld [vmem:[%s864_s16 + $0x30] sm:$0xf]  ;;  %v747_v53 = vld [vmem:[%s864_s16 + $0x34] sm:$0xf0]  ;;  %v702_v54 = vor.u32 %v766_v46, %v699_v47 }
  0x1c   : > { %735 = vmatmul.msk.bf16.vlgmr.msra.gmra.mxu2 %vm412_vm0, %v893_v36  ;;  %431 = vmatpush.bf16.msra.mxu1 %v698_v37  ;;  %v630_v55 = vor.u32 %v748_v48, %v627_v50  ;;  %v681_v56 = vld [vmem:[%s864_s16 + $0xb0] sm:$0xf]  ;;  %v763_v57 = vld [vmem:[%s864_s16 + $0xb4] sm:$0xf0]  ;;  %v764_v58 = vld [vmem:[%s864_s16 + $0xc4] sm:$0xf]  ;;  %v618_v62 = vor.u32 %v747_v53, %v617_v52 }
  0x1d   : > { %468 = vmatpush.bf16.msrb.mxu2 %v718_v27  ;;  %457 = vmatpush.bf16.msra.mxu3 %v638_v42  ;;  %v691_v59 = vld [vmem:[%s864_s16 + $0xc8] sm:$0xf0]  ;;  %v746_v60 = vld [vmem:[%s864_s16 + $0x34] sm:$0xf]  ;;  %v619_v61 = vld [vmem:[%s864_s16 + $0x38] sm:$0xf0]  ;;  %v682_v63 = vor.u32 %v763_v57, %v681_v56 }
  0x1e   : > { %v609_v0 = vld [vmem:[%s864_s16 + $0x20] sm:$0xf]  ;;  %v745_v1 = vld [vmem:[%s864_s16 + $0x24] sm:$0xf0]  ;;  %v694_v2 = vor.u32 %v764_v58, %v691_v59  ;;  %v622_v3 = vor.u32 %v746_v60, %v619_v61  ;;  %v762_v6 = vld [vmem:[%s864_s16 + $0xb4] sm:$0xf] }
  0x1f   : > { %419 = vmatpush.bf16.msra.mxu0 %v626_v49  ;;  %v673_v4 = vld [vmem:[%s864_s16 + $0xa0] sm:$0xf]  ;;  %v761_v5 = vld [vmem:[%s864_s16 + $0xa4] sm:$0xf0]  ;;  %v683_v7 = vld [vmem:[%s864_s16 + $0xb8] sm:$0xf0]  ;;  %v610_v10 = vor.u32 %v745_v1, %v609_v0 }
  0x20   : > { %432 = vmatpush.bf16.msra.mxu1 %v690_v51  ;;  %v744_v8 = vld [vmem:[%s864_s16 + $0x24] sm:$0xf]  ;;  %v611_v9 = vld [vmem:[%s864_s16 + $0x28] sm:$0xf0]  ;;  %v674_v11 = vor.u32 %v761_v5, %v673_v4  ;;  %v601_v12 = vld [vmem:[%s864_s16 + $0x10] sm:$0xf]  ;;  %v686_v14 = vor.u32 %v762_v6, %v683_v7 }
  0x21   : > { %469 = vmatpush.bf16.msrb.mxu2 %v710_v41  ;;  %458 = vmatpush.bf16.msra.mxu3 %v630_v55  ;;  %v743_v13 = vld [vmem:[%s864_s16 + $0x14] sm:$0xf0]  ;;  %v614_v15 = vor.u32 %v744_v8, %v611_v9  ;;  %v665_v16 = vld [vmem:[%s864_s16 + $0x90] sm:$0xf]  ;;  %v760_v18 = vld [vmem:[%s864_s16 + $0xa4] sm:$0xf] }
  0x22   : > { %v759_v17 = vld [vmem:[%s864_s16 + $0x94] sm:$0xf0]  ;;  %v675_v19 = vld [vmem:[%s864_s16 + $0xa8] sm:$0xf0]  ;;  %v742_v20 = vld [vmem:[%s864_s16 + $0x14] sm:$0xf]  ;;  %v602_v22 = vor.u32 %v743_v13, %v601_v12 }
  0x23   : > { %420 = vmatpush.bf16.msra.mxu0 %v618_v62  ;;  %v603_v21 = vld [vmem:[%s864_s16 + $0x18] sm:$0xf0]  ;;  %v593_v23 = vld [vmem:[%s864_s16] sm:$0xf]  ;;  %v666_v25 = vor.u32 %v759_v17, %v665_v16  ;;  %v741_v26 = vld [vmem:[%s864_s16 + $0x4] sm:$0xf0]  ;;  %v678_v29 = vor.u32 %v760_v18, %v675_v19 }
  0x24   : > { %433 = vmatpush.bf16.msra.mxu1 %v682_v63  ;;  %v184_v24 = vld [vmem:[%s964_s1] sm:$0xff]  ;;  %v757_v28 = vld [vmem:[%s864_s16 + $0x84] sm:$0xf0]  ;;  %v606_v30 = vor.u32 %v742_v20, %v603_v21  ;;  %v758_v31 = vld [vmem:[%s864_s16 + $0x94] sm:$0xf]  ;;  %v594_v39 = vor.u32 %v741_v26, %v593_v23 }
  0x25   : > { %470 = vmatpush.bf16.msrb.mxu2 %v702_v54  ;;  %459 = vmatpush.bf16.msra.mxu3 %v622_v3  ;;  %v657_v27 = vld [vmem:[%s864_s16 + $0x80] sm:$0xf]  ;;  %v774_v32 = vld [vmem:[%s864_s16 + $0x114] sm:$0xf]  ;;  %v731_v33 = vld [vmem:[%s864_s16 + $0x118] sm:$0xf0]  ;;  %v224_v38 = vunpack.c.l.b16 %v184_v24  ;;  %v225_v40 = vunpack.c.h.b16 %v184_v24 }
  0x26   : > { %v667_v34 = vld [vmem:[%s864_s16 + $0x98] sm:$0xf0]  ;;  %v740_v35 = vld [vmem:[%s864_s16 + $0x4] sm:$0xf]  ;;  %v595_v37 = vld [vmem:[%s864_s16 + $0x8] sm:$0xf0]  ;;  %v658_v41 = vor.u32 %v757_v28, %v657_v27  ;;  %v734_v42 = vor.u32 %v774_v32, %v731_v33 }
  0x27   : > { %421 = vmatpush.bf16.msra.mxu0 %v610_v10  ;;  %v670_v43 = vor.u32 %v758_v31, %v667_v34  ;;  %v598_v44 = vor.u32 %v740_v35, %v595_v37  ;;  %v772_v45 = vld [vmem:[%s864_s16 + $0x104] sm:$0xf]  ;;  %v723_v46 = vld [vmem:[%s864_s16 + $0x108] sm:$0xf0]  ;;  %v227_v47 = vpack.c.b16 %v224_v38, %v224_v38  ;;  %v228_v50 = vpack.c.b16 %v225_v40, %v225_v40 }
  0x28   : > { %434 = vmatpush.bf16.msra.mxu1 %v674_v11  ;;  %v756_v48 = vld [vmem:[%s864_s16 + $0x84] sm:$0xf]  ;;  %v659_v49 = vld [vmem:[%s864_s16 + $0x88] sm:$0xf0]  ;;  %v726_v51 = vor.u32 %v772_v45, %v723_v46 }
  0x29   : > { %471 = vmatpush.bf16.msrb.mxu2 %v694_v2  ;;  %460 = vmatpush.bf16.msra.mxu3 %v614_v15  ;;  %v662_v52 = vor.u32 %v756_v48, %v659_v49 }
  0x2b   : > { %422 = vmatpush.bf16.msra.mxu0 %v602_v22 }
  0x2c   : > { %435 = vmatpush.bf16.msra.mxu1 %v666_v25 }
  0x2d   : > { %472 = vmatpush.bf16.msrb.mxu2 %v686_v14  ;;  %461 = vmatpush.bf16.msra.mxu3 %v606_v30 }
  0x2f   : > { %423 = vmatpush.bf16.msra.mxu0 %v594_v39 }
  0x30   : > { %436 = vmatpush.bf16.msra.mxu1 %v658_v41 }
  0x31   : > { %473 = vmatpush.bf16.msrb.mxu2 %v678_v29  ;;  %462 = vmatpush.bf16.msra.mxu3 %v598_v44 }
  0x32   : > { %424 = vmatmul.bf16.vlgmr.msra.gmra.mxu0 %v227_v47 }
  0x33   : > { %487 = vmatpush.bf16.msrb.mxu0 %v734_v42  ;;  %437 = vmatmul.bf16.vlgmr.msra.gmra.mxu1 %v228_v50 }
  0x34   : > { %463 = vmatmul.bf16.vlgmr.msra.gmra.mxu3 %v227_v47 }
  0x35   : > { %474 = vmatpush.bf16.msrb.mxu2 %v670_v43 }
  0x37   : > { %488 = vmatpush.bf16.msrb.mxu0 %v726_v51 }
  0x39   : > { %475 = vmatpush.bf16.msrb.mxu2 %v662_v52 }
  0x3c   : > { %476 = vmatmul.bf16.vlgmr.msrb.gmra.mxu2 %v228_v50 }
  0x42   : > { %736 = vmatmul.msk.bf16.vlgmr.msrb.gmra.mxu0 %vm412_vm0, %v893_v36 }
  0x9f   : > { %v451_v53 = vpop.f32.mrf.mxu2 }
  0xa7   : > { %v453_v54 = vpop.f32.mrf.mxu2 }
  0xaf   : > { %v425_v55 = vpop.f32.mrf.mxu0 }
  0xb0   : > { %v438_v56 = vpop.f32.mrf.mxu1 }
  0xb1   : > { %v439_v57 = vadd.f32 %v438_v56, %v425_v55 }
  0xb3   : > { %v452_v58 = vadd.f32 %v451_v53, %v439_v57 }
  0xb5   : > { %494 = vst [vmem:[%s181_s24] sm:$0xff] %v452_v58 }
  0xb7   : > { %v427_v59 = vpop.f32.mrf.mxu0  ;;  %v464_v60 = vpop.f32.mrf.mxu3 }
  0xb8   : > { %v440_v61 = vpop.f32.mrf.mxu1 }
  0xbf   : > { %v477_v62 = vpop.f32.mrf.mxu2  ;;  %v466_v0 = vpop.f32.mrf.mxu3 }
  0xc0   : > { %v478_v63 = vadd.f32 %v477_v62, %v464_v60  ;;  %v490_v1 = vpop.f32.mrf.mxu0 }
  0xc2   : > { %v491_v36 = vadd.f32 %v490_v1, %v478_v63 }
  0xc4   : > { %495 = vst [vmem:[%s181_s24 + $0x8] sm:$0xff] %v491_v36 }
  0xc7   : > { %v479_v2 = vpop.f32.mrf.mxu2 }
  0xc8   : > { %v492_v3 = vpop.f32.mrf.mxu0 }
  0xc9 PF: > { %s12_s11 = sadd.s32 1, %s823_s11   ;;  %s966_s9 = smov %s819_s10 }
  0xca   : > { %p9_p5 = scmp.ge.s32.totalorder %s12_s11, 4   ;;  %s967_s10 = smov %s969_s12 }
  0xcc   :  { %11 = sbr.rel (!%p9_p5) target bundleno = 2 (0x2), region = 58 }

</bundles_post_ra>
